<compile_context>
chip_gen: v7x
topology: tpu7x:2x2x1
jax: 0.10.0
libtpu: 0.0.40
codegen_flags: <defaults>
</compile_context>

<pallas_src>
import functools

import jax
import jax.numpy as jnp
from jax.experimental import pallas as pl
from jax.experimental.pallas import tpu as pltpu


# ----------------------------------------------------------------------------- helpers

def _pad_last(a, mult=128):
    """Zero-pad the last (point / lane) axis to a multiple of `mult`; returns (padded, orig_n)."""
    n = a.shape[-1]
    pad = (-n) % mult
    if pad:
        widths = [(0, 0)] * (a.ndim - 1) + [(0, pad)]
        a = jnp.pad(a, widths)
    return a, n


def _pick_tile(total, preferred, align):
    """Largest multiple of `align` <= preferred that divides `total` (total is pre-padded)."""
    if total <= preferred:
        return total
    t = (preferred // align) * align
    while t >= align:
        if total % t == 0:
            return t
        t -= align
    return total


def fold_bn(w, b, gamma, beta, mean, var, eps=1e-5):
    """Fold inference-mode BatchNorm into the preceding 1x1 conv (w: (C_out, C_in))."""
    scale = gamma / jnp.sqrt(var + eps)
    return w * scale[:, None], (b - mean) * scale + beta


def knn_idx(pos, k):
    """pos: (B, 3, N) -> indices of the k nearest neighbors, (B, N, k) int32."""
    p = jnp.transpose(pos, (0, 2, 1))                       # (B, N, 3)
    sq = jnp.sum(p * p, axis=-1)
    dist = sq[:, :, None] + sq[:, None, :] - 2.0 * jnp.einsum('bnc,bmc->bnm', p, p)
    _, idx = jax.lax.top_k(-dist, k)                        # smallest distances
    return idx


# ----------------------------------------------------------------------------- 1x1 conv (NCL) kernels

def _conv1x1_kernel(x_ref, w_ref, b_ref, o_ref):
    y = jnp.dot(w_ref[...], x_ref[0], preferred_element_type=jnp.float32) + b_ref[...]
    o_ref[0] = y.astype(o_ref.dtype)


def _conv1x1_res_kernel(x_ref, w_ref, b_ref, r_ref, o_ref):
    y = jnp.dot(w_ref[...], x_ref[0], preferred_element_type=jnp.float32) + b_ref[...]
    o_ref[0] = (y + r_ref[0].astype(jnp.float32)).astype(o_ref.dtype)


def conv1x1_ncl(x, w, b, residual=None, *, tile_n=2048):
    """Pointwise Conv1d in NCL layout: out[b] = w @ x[b] + bias (+ residual)."""
    B, c_in, _ = x.shape
    c_out = w.shape[0]
    x, n0 = _pad_last(x)
    if residual is not None:
        residual, _ = _pad_last(residual)
    Np = x.shape[-1]
    tn = _pick_tile(Np, tile_n, 128)
    grid = (B, Np // tn)
    bias = b.reshape(c_out, 1)

    in_specs = [
        pl.BlockSpec((1, c_in, tn), lambda bi, ni: (bi, 0, ni)),
        pl.BlockSpec((c_out, c_in), lambda bi, ni: (0, 0)),
        pl.BlockSpec((c_out, 1), lambda bi, ni: (0, 0)),
    ]
    args = [x, w, bias]
    kernel = _conv1x1_kernel
    if residual is not None:
        in_specs.append(pl.BlockSpec((1, c_out, tn), lambda bi, ni: (bi, 0, ni)))
        args.append(residual)
        kernel = _conv1x1_res_kernel

    bytes_accessed = 4 * (x.size + w.size + bias.size + B * c_out * Np)
    if residual is not None:
        bytes_accessed += 4 * residual.size

    out = pl.pallas_call(
        kernel,
        out_shape=jax.ShapeDtypeStruct((B, c_out, Np), x.dtype),
        grid_spec=pltpu.PrefetchScalarGridSpec(
            num_scalar_prefetch=0,
            grid=grid,
            in_specs=in_specs,
            out_specs=pl.BlockSpec((1, c_out, tn), lambda bi, ni: (bi, 0, ni)),
        ),
        compiler_params=pltpu.CompilerParams(
            dimension_semantics=("parallel", "parallel")),
        cost_estimate=pl.CostEstimate(
            flops=2 * B * Np * c_in * c_out,
            transcendentals=0,
            bytes_accessed=int(bytes_accessed)),
    )(*args)
    return out[..., :n0]


# ----------------------------------------------------------------------------- 2-layer MLP, NCL / lane-dense (pos_mlp)

def _mlp2_ncl_kernel(x_ref, w1_ref, b1_ref, w2_ref, b2_ref, o_ref):
    h = jnp.dot(w1_ref[...], x_ref[0], preferred_element_type=jnp.float32) + b1_ref[...]
    h = jnp.maximum(h, 0.0)
    y = jnp.dot(w2_ref[...], h, preferred_element_type=jnp.float32) + b2_ref[...]
    o_ref[0] = y.astype(o_ref.dtype)


def mlp2_ncl(x, w1, b1, w2, b2, *, tile_n=2048):
    """relu(w1 @ x + b1), then w2 @ . + b2, channels-first with the point axis on lanes."""
    BB, c_in, _ = x.shape
    c_hid = w1.shape[0]
    c_out = w2.shape[0]
    x, n0 = _pad_last(x)
    Np = x.shape[-1]
    tn = _pick_tile(Np, tile_n, 128)
    grid = (BB, Np // tn)

    out = pl.pallas_call(
        _mlp2_ncl_kernel,
        out_shape=jax.ShapeDtypeStruct((BB, c_out, Np), x.dtype),
        grid_spec=pltpu.PrefetchScalarGridSpec(
            num_scalar_prefetch=0,
            grid=grid,
            in_specs=[
                pl.BlockSpec((1, c_in, tn), lambda b, i: (b, 0, i)),
                pl.BlockSpec((c_hid, c_in), lambda b, i: (0, 0)),
                pl.BlockSpec((c_hid, 1), lambda b, i: (0, 0)),
                pl.BlockSpec((c_out, c_hid), lambda b, i: (0, 0)),
                pl.BlockSpec((c_out, 1), lambda b, i: (0, 0)),
            ],
            out_specs=pl.BlockSpec((1, c_out, tn), lambda b, i: (b, 0, i)),
        ),
        compiler_params=pltpu.CompilerParams(
            dimension_semantics=("parallel", "parallel")),
        cost_estimate=pl.CostEstimate(
            flops=2 * BB * Np * (c_in * c_hid + c_hid * c_out),
            transcendentals=0,
            bytes_accessed=int(4 * (x.size + w1.size + w2.size + BB * c_out * Np))),
    )(x, w1, b1.reshape(-1, 1), w2, b2.reshape(-1, 1))
    return out[..., :n0]


# ----------------------------------------------------------------------------- fused per-head attention core

def _attn_heads_kernel(q_ref, k_ref, v_ref, pe_ref, w1_ref, b1_ref, w2_ref, b2_ref,
                       o_ref, *, head_width, head_stride):
    h = pl.program_id(2)
    K = k_ref.shape[1]
    off = pl.multiple_of(h * head_stride, head_stride)

    # per-head 16-channel window (sublane-aligned dynamic slice of the resident 64-ch blocks)
    q_h = q_ref[0, pl.ds(off, head_width), :]                 # (C, tn)
    v_h = v_ref[0, pl.ds(off, head_width), :]                 # (C, tn)
    k_h = k_ref[0, :, pl.ds(off, head_width), :]              # (K, C, tn)
    pe = pe_ref[0]                                            # (K, C, tn)

    x = q_h[None, :, :] - k_h + pe                            # (K, C, tn)

    # attn_mlp (BN folded): K batched lane-dense matmuls on the MXU, f32 accumulation.
    w1b = jnp.broadcast_to(w1_ref[...][None], (K,) + w1_ref.shape)      # (K, 64, C)
    hmid = jax.lax.dot_general(w1b, x, (((2,), (1,)), ((0,), (0,))),
                               preferred_element_type=jnp.float32)      # (K, 64, tn)
    hmid = jnp.maximum(hmid + b1_ref[...][None], 0.0)
    w2b = jnp.broadcast_to(w2_ref[...][None], (K,) + w2_ref.shape)      # (K, C, 64)
    a = jax.lax.dot_general(w2b, hmid, (((2,), (1,)), ((0,), (0,))),
                            preferred_element_type=jnp.float32)         # (K, C, tn)
    a = a + b2_ref[...][None]

    # softmax over neighbors (leading K axis) + aggregation via the sum-to-1 identity:
    #   out = v + sum_k(e * pe) / sum_k(e)
    a = a - jnp.max(a, axis=0, keepdims=True)
    e = jnp.exp(a)                                            # (K, C, tn)
    num = jnp.sum(e * pe, axis=0)                             # (C, tn)
    den = jnp.sum(e, axis=0)                                  # (C, tn)
    o_ref[0, 0] = (v_h + num / den).astype(o_ref.dtype)


def attn_heads_pallas(q, k_g, v, pe, w1, b1, w2, b2, *,
                      heads, head_width, head_stride, tile_n=512):
    """q,v: (B, 64, N); k_g: (B, K, 64, N); pe: (B, K, C, N) -> agg: (B, heads, C, N)."""
    B, c_all, _ = q.shape
    K = k_g.shape[1]
    c_hid = w1.shape[0]

    q, n0 = _pad_last(q)
    k_g, _ = _pad_last(k_g)
    v, _ = _pad_last(v)
    pe, _ = _pad_last(pe)
    Np = q.shape[-1]
    tn = _pick_tile(Np, tile_n, 128)
    grid = (B, Np // tn, heads)          # head axis innermost: q/k/v/pe blocks stay resident

    kernel = functools.partial(_attn_heads_kernel,
                               head_width=head_width, head_stride=head_stride)

    bytes_accessed = 4 * (q.size + k_g.size + v.size + pe.size
                          + w1.size + w2.size + B * heads * head_width * Np)

    out = pl.pallas_call(
        kernel,
        out_shape=jax.ShapeDtypeStruct((B, heads, head_width, Np), q.dtype),
        grid_spec=pltpu.PrefetchScalarGridSpec(
            num_scalar_prefetch=0,
            grid=grid,
            in_specs=[
                pl.BlockSpec((1, c_all, tn), lambda b, i, h: (b, 0, i)),          # q (64 ch)
                pl.BlockSpec((1, K, c_all, tn), lambda b, i, h: (b, 0, 0, i)),    # gathered k
                pl.BlockSpec((1, c_all, tn), lambda b, i, h: (b, 0, i)),          # v (64 ch)
                pl.BlockSpec((1, K, head_width, tn), lambda b, i, h: (b, 0, 0, i)),  # pos emb
                pl.BlockSpec((c_hid, head_width), lambda b, i, h: (0, 0)),        # attn w1
                pl.BlockSpec((c_hid, 1), lambda b, i, h: (0, 0)),
                pl.BlockSpec((head_width, c_hid), lambda b, i, h: (0, 0)),        # attn w2
                pl.BlockSpec((head_width, 1), lambda b, i, h: (0, 0)),
            ],
            out_specs=pl.BlockSpec((1, 1, head_width, tn), lambda b, i, h: (b, h, 0, i)),
        ),
        compiler_params=pltpu.CompilerParams(
            dimension_semantics=("parallel", "parallel", "arbitrary")),
        cost_estimate=pl.CostEstimate(
            flops=4 * B * Np * heads * K * head_width * c_hid,
            transcendentals=B * Np * heads * K * head_width,
            bytes_accessed=int(bytes_accessed)),
    )(q, k_g, v, pe, w1, b1.reshape(-1, 1), w2, b2.reshape(-1, 1))
    return out[..., :n0]


# ----------------------------------------------------------------------------- full forward (Pallas)

def transformer_channel_pallas(x, pos, params, *, n_knn=16, psi=4):
    B, in_c, N = x.shape
    hw = 64 // psi           # head width (16)
    d = hw // 2              # head stride (8)
    heads = 2 * psi - 1      # 7
    c_need = psi * hw        # 64: only these channels of q/k/v are ever used

    identity = x

    # ---- fold linear_start into the fused q/k/v projection (single lane-dense matmul)
    w_stack = jnp.concatenate([params['w_query'][:c_need],
                               params['w_key'][:c_need],
                               params['w_value'][:c_need]], axis=0)       # (192, dim)
    b_stack = jnp.concatenate([params['b_query'][:c_need],
                               params['b_key'][:c_need],
                               params['b_value'][:c_need]], axis=0)       # (192,)
    w_qkv = w_stack @ params['w_start']                                   # (192, in_c)
    b_qkv = w_stack @ params['b_start'] + b_stack                         # (192,)

    qkv = conv1x1_ncl(x, w_qkv, b_qkv)                                    # (B, 192, N)
    q64 = qkv[:, 0:c_need]
    k64 = qkv[:, c_need:2 * c_need]
    v64 = qkv[:, 2 * c_need:3 * c_need]

    # ---- k-NN + neighbor gathers (JAX glue; see TODOs at top)
    idx = knn_idx(pos, n_knn)                                             # (B, N, K)
    gather_cf = jax.vmap(lambda f, i: f[:, i])                            # (C,N),(N,K)->(C,N,K)

    pos_rel = pos[:, :, :, None] - gather_cf(pos, idx)                    # (B, 3, N, K)
    pos_rel = jnp.transpose(pos_rel, (0, 3, 1, 2)).reshape(B * n_knn, 3, N)  # (B*K, 3, N)

    k_g = jnp.transpose(gather_cf(k64, idx), (0, 3, 1, 2))                # (B, K, 64, N)

    # ---- pos_mlp (channels-first, lane-dense, BN folded) -> (B, K, 16, N)
    wp1, bp1 = fold_bn(params['w_pos1'], params['b_pos1'], *params['pos_bn'])
    pe = mlp2_ncl(pos_rel, wp1, bp1, params['w_pos2'], params['b_pos2'])  # (B*K, 16, N)
    pe = pe.reshape(B, n_knn, hw, N)

    # ---- fused per-head attention core
    wa1, ba1 = fold_bn(params['w_attn1'], params['b_attn1'], *params['attn_bn'])
    agg = attn_heads_pallas(q64, k_g, v64, pe,
                            wa1, ba1, params['w_attn2'], params['b_attn2'],
                            heads=heads, head_width=hw, head_stride=d)    # (B, H, 16, N)
    agg = agg.reshape(B, heads * hw, N)    # contiguous -> matches torch.cat(agg_list, dim=1)

    # ---- linear_end + residual (fused)
    return conv1x1_ncl(agg, params['w_end'], params['b_end'], residual=identity)


# ----------------------------------------------------------------------------- params + reference

def init_params(key, in_channel, dim, pos_hidden_dim=64, attn_hidden_multiplier=4,
                dtype=jnp.float32):
    psi = 4
    hw = 64 // psi
    heads = 2 * psi - 1
    attn_hidden = 16 * attn_hidden_multiplier
    ks = iter(jax.random.split(key, 40))

    def conv(out_c, in_c):
        bound = 1.0 / (in_c ** 0.5)
        wk = jax.random.uniform(next(ks), (out_c, in_c), dtype, -bound, bound)
        bk = jax.random.uniform(next(ks), (out_c,), dtype, -bound, bound)
        return wk, bk

    def bn(c):
        g = jax.random.uniform(next(ks), (c,), dtype, 0.8, 1.2)
        be = jax.random.uniform(next(ks), (c,), dtype, -0.1, 0.1)
        mu = 0.1 * jax.random.normal(next(ks), (c,), dtype)
        var = jax.random.uniform(next(ks), (c,), dtype, 0.5, 1.5)
        return (g, be, mu, var)

    p = {}
    p['w_start'], p['b_start'] = conv(dim, in_channel)
    p['w_key'], p['b_key'] = conv(dim, dim)
    p['w_query'], p['b_query'] = conv(dim, dim)
    p['w_value'], p['b_value'] = conv(dim, dim)
    p['w_pos1'], p['b_pos1'] = conv(pos_hidden_dim, 3)
    p['pos_bn'] = bn(pos_hidden_dim)
    p['w_pos2'], p['b_pos2'] = conv(16, pos_hidden_dim)
    p['w_attn1'], p['b_attn1'] = conv(attn_hidden, 16)
    p['attn_bn'] = bn(attn_hidden)
    p['w_attn2'], p['b_attn2'] = conv(16, attn_hidden)
    p['w_end'], p['b_end'] = conv(in_channel, heads * hw)
    return p


def transformer_channel_reference(x, pos, params, *, n_knn=16, psi=4, eps=1e-5):
    """Pure-JAX replica of the PyTorch forward (BatchNorm in inference mode)."""
    hw = 64 // psi
    d = hw // 2
    heads = 2 * psi - 1

    def conv1d(v, wt, bi):
        return jnp.einsum('oi,bin->bon', wt, v) + bi[None, :, None]

    def conv2d(v, wt, bi):
        return jnp.einsum('oi,bink->bonk', wt, v) + bi[None, :, None, None]

    def bn2d(v, bn):
        g, be, mu, var = bn
        s = (g / jnp.sqrt(var + eps))
        return (v - mu[None, :, None, None]) * s[None, :, None, None] + be[None, :, None, None]

    identity = x
    xf = conv1d(x, params['w_start'], params['b_start'])
    idx = knn_idx(pos, n_knn)
    key = conv1d(xf, params['w_key'], params['b_key'])
    value = conv1d(xf, params['w_value'], params['b_value'])
    query = conv1d(xf, params['w_query'], params['b_query'])

    group = jax.vmap(lambda f, i: f[:, i])                      # (C,N),(N,K)->(C,N,K)
    pos_rel = pos[:, :, :, None] - group(pos, idx)
    pe = conv2d(pos_rel, params['w_pos1'], params['b_pos1'])
    pe = jnp.maximum(bn2d(pe, params['pos_bn']), 0.0)
    pe = conv2d(pe, params['w_pos2'], params['b_pos2'])

    aggs = []
    for m in range(heads):
        q_m = query[:, m * d:m * d + hw, :]
        k_m = group(key[:, m * d:m * d + hw, :], idx)
        v_m = value[:, m * d:m * d + hw, :]
        qk_rel = q_m[:, :, :, None] - k_m
        a = conv2d(qk_rel + pe, params['w_attn1'], params['b_attn1'])
        a = jnp.maximum(bn2d(a, params['attn_bn']), 0.0)
        a = conv2d(a, params['w_attn2'], params['b_attn2'])
        a = jax.nn.softmax(a, axis=-1)
        aggs.append(jnp.sum(a * (v_m[:, :, :, None] + pe), axis=-1))
    agg = jnp.concatenate(aggs, axis=1)
    y = conv1d(agg, params['w_end'], params['b_end'])
    return y + identity


# ----------------------------------------------------------------------------- demo

if __name__ == "__main__":
    jax.config.update("jax_default_matmul_precision", "highest")

    key = jax.random.PRNGKey(0)
    kx, kpos, kp = jax.random.split(key, 3)

    B, in_channel, N = 2, 64, 128
    dim, n_knn, pos_hidden, attn_mult = 256, 16, 64, 4

    x = jax.random.normal(kx, (B, in_channel, N), dtype=jnp.float32)
    pos = jax.random.normal(kpos, (B, 3, N), dtype=jnp.float32)
    params = init_params(kp, in_channel, dim, pos_hidden, attn_mult)

    out = transformer_channel_pallas(x, pos, params, n_knn=n_knn)
    out = jax.block_until_ready(out)

    ref = transformer_channel_reference(x, pos, params, n_knn=n_knn)
    assert out.shape == (B, in_channel, N)
    max_diff = float(jnp.max(jnp.abs(out - ref)))
    assert jnp.allclose(out, ref, atol=5e-3, rtol=5e-3), f"mismatch vs reference, max|diff|={max_diff}"

    print("KERNEL_OK")
</pallas_src>

<mosaic_0001>
module attributes {stable_mosaic.version = 11 : i64} {
  func.func @_conv1x1_kernel(%arg0: i32, %arg1: i32, %arg2: memref<1x64x128xf32, #tpu.memory_space<vmem>>, %arg3: memref<192x64xf32, #tpu.memory_space<vmem>>, %arg4: memref<192x1xf32, #tpu.memory_space<vmem>>, %arg5: memref<1x192x128xf32, #tpu.memory_space<vmem>>) attributes {dimension_semantics = [#tpu.dimension_semantics<parallel>, #tpu.dimension_semantics<parallel>], iteration_bounds = array<i64: 2, 1>, scalar_prefetch = 0 : i64, scratch_operands = 0 : i64, tpu.core_type = #tpu.core_type<tc>, window_params = [{transform_indices = @transform_0, window_bounds = array<i64: 1, 64, 128>}, {pipeline_mode = #tpu.pipeline_mode<synchronous>, transform_indices = @transform_1, window_bounds = array<i64: 192, 64>}, {pipeline_mode = #tpu.pipeline_mode<synchronous>, transform_indices = @transform_2, window_bounds = array<i64: 192, 1>}, {transform_indices = @transform_3, window_bounds = array<i64: 1, 192, 128>}]} {
    %c0 = arith.constant 0 : index
    %c0_0 = arith.constant 0 : index
    %0 = vector.load %arg3[%c0, %c0_0] : memref<192x64xf32, #tpu.memory_space<vmem>>, vector<192x64xf32>
    %c0_1 = arith.constant 0 : index
    %c0_2 = arith.constant 0 : index
    %c0_3 = arith.constant 0 : index
    %1 = vector.load %arg2[%c0_1, %c0_2, %c0_3] : memref<1x64x128xf32, #tpu.memory_space<vmem>>, vector<1x64x128xf32>
    %2 = vector.shape_cast %1 : vector<1x64x128xf32> to vector<64x128xf32>
    %cst = arith.constant dense<0.000000e+00> : vector<192x128xf32>
    %3 = tpu.matmul %0, %2, %cst {dimension_numbers = #tpu.dot_dimension_numbers<[1], [0], [0], [1], [0, 0, 1, 1], [], []>, precision = #tpu.contract_precision<fp32>} : vector<192x64xf32>, vector<64x128xf32>, vector<192x128xf32> -> vector<192x128xf32>
    %c0_4 = arith.constant 0 : index
    %c0_5 = arith.constant 0 : index
    %4 = vector.load %arg4[%c0_4, %c0_5] : memref<192x1xf32, #tpu.memory_space<vmem>>, vector<192x1xf32>
    %5 = vector.broadcast %4 : vector<192x1xf32> to vector<192x128xf32>
    %6 = arith.addf %3, %5 : vector<192x128xf32>
    %c0_6 = arith.constant 0 : index
    %c0_7 = arith.constant 0 : index
    %c0_8 = arith.constant 0 : index
    %7 = vector.load %arg5[%c0_6, %c0_7, %c0_8] : memref<1x192x128xf32, #tpu.memory_space<vmem>>, vector<1x192x128xf32>
    %8 = vector.shape_cast %7 : vector<1x192x128xf32> to vector<192x128xf32>
    %9 = vector.shape_cast %6 : vector<192x128xf32> to vector<1x192x128xf32>
    tpu.vector_store %arg5[%c0_6, %c0_7, %c0_8], %9 {strides = array<i32>} : memref<1x192x128xf32, #tpu.memory_space<vmem>>, vector<1x192x128xf32>,
    return
  }
  func.func @transform_0(%arg0: i32, %arg1: i32) -> (i32, i32, i32) {
    %c0_i32 = arith.constant 0 : i32
    %c0_i32_0 = arith.constant 0 : i32
    return %arg0, %c0_i32, %arg1 : i32, i32, i32
  }
  func.func @transform_1(%arg0: i32, %arg1: i32) -> (i32, i32) {
    %c0_i32 = arith.constant 0 : i32
    %c0_i32_0 = arith.constant 0 : i32
    %c0_i32_1 = arith.constant 0 : i32
    return %c0_i32, %c0_i32_0 : i32, i32
  }
  func.func @transform_2(%arg0: i32, %arg1: i32) -> (i32, i32) {
    %c0_i32 = arith.constant 0 : i32
    %c0_i32_0 = arith.constant 0 : i32
    %c0_i32_1 = arith.constant 0 : i32
    return %c0_i32, %c0_i32_0 : i32, i32
  }
  func.func @transform_3(%arg0: i32, %arg1: i32) -> (i32, i32, i32) {
    %c0_i32 = arith.constant 0 : i32
    %c0_i32_0 = arith.constant 0 : i32
    return %arg0, %c0_i32, %arg1 : i32, i32, i32
  }
}

</mosaic_0001>

<bundles_post_ra>
// kernel: tpu_custom_call.1
= control target key start
LH: loop header
LB: loop body
LE: loop exit
PB: predicated region body
PF: predicated region fallthrough
CT: control target
= control target key end

     0   :  { %8 = vsyncpa [#allocation3], 0  ;;  %s3778_s0 = inlined_call_operand.vmem [shape: f32[2,64,128], index: 0, kind: input, shape index: {}]   ;;  %s3779_s1 = inlined_call_operand.vmem [shape: f32[192,64], index: 1, kind: input, shape index: {}]   ;;  %s3780_s2 = inlined_call_operand.vmem [shape: f32[192,1], index: 2, kind: input, shape index: {}]   ;;  %s3781_s3 = inlined_call_operand.hbm [shape: f32[2,192,128], index: 3, kind: output, shape index: {}]  }
   0x1   :  { %10 = vsyncpa [#allocation3 + $0x1], 0  ;;  %s3007_s12 = smov 0   ;;  %s3009_s13 = smov 0  }
   0x2   :  { %s3011_s14 = smov 0   ;;  %s3013_s15 = smov 0  }
   0x3   :  { %s3015_s16 = smov 0   ;;  %s3017_s17 = smov 0  }
   0x4 LB: > { %s2086_s18 = sadd.s32 4294967295, %s2981_s17   ;;  %s2087_s19 = sadd.s32 4294967294, %s2981_s17   ;;  %s2981_s17 = sphi %s3017_s17, %s16_s17   ;;  %s2977_s16 = sphi %s3015_s16, %s3856_s16   ;;  %s2973_s15 = sphi %s3013_s15, %s3855_s15   ;;  %s2969_s14 = sphi %s3011_s14, %s3854_s14   ;;  %s2965_s13 = sphi %s3009_s13, %s3853_s13   ;;  %s2961_s12 = sphi %s3007_s12, %s3852_s12  }
   0x5   : > { %s28_s20 = sadd.s32 1, %s2977_s16  ;;  %s107_s21 = sadd.s32 1, %s2969_s14 }
   0x6   : > { %p30_p0 = scmp.ge.s32.totalorder %s28_s20, 2  ;;  %p117_p1 = scmp.ne.s32.totalorder %s2969_s14, %s2965_s13 }
   0x7   : > { %p118_p2 = scmp.eq.s32.totalorder %s2086_s18, 1  ;;  %p123_p3 = scmp.ne.s32.totalorder %s2965_s13, %s2961_s12 }
   0x8   : > { %s3858_s20 = smov (%p30_p0, %s28_s20), 0  ;;  %p124_p5 = scmp.eq.s32.totalorder %s2087_s19, 1 }
   0x9   : > { %p3047_p4 = por %p118_p2, %p117_p1  ;;  %s102_s23 = ssub.s32 %s2977_s16, %s3858_s20 }
   0xa   : > { %p2090_p6 = scmp.ge.s32.totalorder %s2981_s17, 1  ;;  %p105_p7 = scmp.eq.s32.totalorder %s102_s23, 0 }
   0xb   : > { %p3054_p8 = por %p124_p5, %p123_p3  ;;  %p159_p9 = scmp.lt.s32.totalorder %s2981_s17, 3 }
   0xc   : > { %s3060_s25 = scalar_select %p105_p7, %s2969_s14, %s107_s21  }
   0xd   : > { %p160_p10 = pnand %p2090_p6, %p159_p9 }
   0xf   : > { %163 = sbr.rel (%p160_p10) target bundleno = 421 (0x1a5), region = 32 }
  0x16   : > { %p186_p11 = scmp.lt.s32.totalorder %s2973_s15, 1  ;;  %v194_v0 = vld [vmem:[%s3779_s1] sm:$0xff]  ;;  %vm370_vm0 = vcmask 523264   ;;  %v195_v1 = vld [vmem:[%s3779_s1 + $0x8] sm:$0xff]  ;;  %v196_v2 = vld [vmem:[%s3779_s1 + $0x10] sm:$0xff]  ;;  %s2842_s28 = smul.u32 3072, %s2973_s15 }
  0x17   : > { %v372_v3 = vsel %vm370_vm0, %v194_v0, 0  ;;  %v375_v4 = vsel %vm370_vm0, %v195_v1, 0  ;;  %v378_v5 = vsel %vm370_vm0, %v196_v2, 0  ;;  %v197_v6 = vld [vmem:[%s3779_s1 + $0x18] sm:$0xff]  ;;  %v198_v10 = vld [vmem:[%s3779_s1 + $0x20] sm:$0xff]  ;;  %v199_v11 = vld [vmem:[%s3779_s1 + $0x28] sm:$0xff] }
  0x18   : > { %s187_s7 = scalar_select %p186_p11, %s2973_s15, 1  ;;  %v3079_v7 = vand.u32 4294901760, %v372_v3  ;;  %v381_v8 = vsel %vm370_vm0, %v197_v6, 0  ;;  %v3082_v9 = vand.u32 4294901760, %v375_v4  ;;  %v3093_v13 = vand.u32 4294901760, %v378_v5  ;;  %v200_v15 = vld [vmem:[%s3779_s1 + $0x30] sm:$0xff] }
  0x19   : > { %v3098_v14 = vand.u32 4294901760, %v381_v8  ;;  %v384_v20 = vsel %vm370_vm0, %v198_v10, 0  ;;  %v387_v21 = vsel %vm370_vm0, %v199_v11, 0  ;;  %v390_v32 = vsel %vm370_vm0, %v200_v15, 0  ;;  %v201_v47 = vld [vmem:[%s3779_s1 + $0x38] sm:$0xff]  ;;  %v202_v61 = vld [vmem:[%s3779_s1 + $0x40] sm:$0xff]  ;;  %s3724_s5 = scalar_lea.hbm %s3781_s3, %s2842_s28 }
  0x1a   : > { %s2096_s18 = sshll.u32 %s187_s7, 6  ;;  %v3091_v12 = vsub.f32 %v372_v3, %v3079_v7  ;;  %v3114_v28 = vsub.f32 %v375_v4, %v3082_v9  ;;  %v3118_v31 = vsub.f32 %v378_v5, %v3093_v13  ;;  %v3129_v38 = vand.u32 4294901760, %v384_v20  ;;  %v203_v62 = vld [vmem:[%s3779_s1 + $0x48] sm:$0xff]  ;;  %v204_v6 = vld [vmem:[%s3779_s1 + $0x50] sm:$0xff]  ;;  %s2984_s7 = smov [#allocation2]  }
  0x1b   : > { %s193_s23 = scalar_lea.vmem %s3778_s0, %s2096_s18  ;;  %v3136_v42 = vsub.f32 %v381_v8, %v3098_v14  ;;  %v3143_v45 = vand.u32 4294901760, %v387_v21  ;;  %v3145_v46 = vand.u32 4294901760, %v390_v32  ;;  %v393_v56 = vsel %vm370_vm0, %v201_v47, 0  ;;  %s2907_s8 = sshll.u32 %s2984_s7, 4  ;;  %s2908_s8 = int_to_ptr.vmem [resolvable:$false] %s2907_s8 }
  0x1c   : > { %v218_v16 = vld [vmem:[%s193_s23] sm:$0xff]  ;;  %v219_v17 = vld [vmem:[%s193_s23 + $0x8] sm:$0xff]  ;;  %v3103_v18 = vld [vmem:[%s193_s23 + $0x10] sm:$0xff]  ;;  %v518_v19 = vand.u32 4294901760, %v3091_v12  ;;  %3806 = vst [vmem:[#allocation5_spill] sm:$0xff] %v3114_v28  ;;  %v528_v43 = vand.u32 4294901760, %v3114_v28  ;;  %v3167_v55 = vsub.f32 %v384_v20, %v3129_v38 }
  0x1d   : > { %v444_v22 = vand.u32 4294901760, %v218_v16  ;;  %v447_v23 = vand.u32 4294901760, %v219_v17  ;;  %v221_v24 = vld [vmem:[%s193_s23 + $0x18] sm:$0xff]  ;;  %v450_v25 = vand.u32 4294901760, %v3103_v18  ;;  %v3109_v26 = vld [vmem:[%s193_s23 + $0x20] sm:$0xff]  ;;  %v3111_v27 = vld [vmem:[%s193_s23 + $0x28] sm:$0xff]  ;;  %v3178_v60 = vsub.f32 %v387_v21, %v3143_v45 }
  0x1e   : > { %v453_v29 = vand.u32 4294901760, %v221_v24  ;;  %v519_v30 = vsub.f32 %v3091_v12, %v518_v19  ;;  %2461 = vmatprep.mubr.f32.mxu0 %v518_v19  ;;  %3807 = vst [vmem:[#allocation6_spill] sm:$0xff] %v3118_v31  ;;  %v456_v34 = vand.u32 4294901760, %v3109_v26  ;;  %v459_v35 = vand.u32 4294901760, %v3111_v27  ;;  %v3125_v36 = vld [vmem:[%s193_s23 + $0x30] sm:$0xff]  ;;  %v3127_v37 = vld [vmem:[%s193_s23 + $0x38] sm:$0xff] }
  0x1f   : > { %v3121_v33 = vpack.c.bf16 %v447_v23, %v444_v22  ;;  %v3133_v41 = vsub.f32 %v218_v16, %v444_v22  ;;  %3808 = vst [vmem:[#allocation7_spill] sm:$0xff] %v3136_v42  ;;  %v3141_v44 = vsub.f32 %v219_v17, %v447_v23  ;;  %v3783_v48 = vand.u32 4294901760, %v3125_v36  ;;  %3809 = vst [vmem:[#allocation8_spill] sm:$0xff] %v3167_v55  ;;  %s183_s23 = sand.u32 1, %s2965_s13   ;;  %s2909_s9 = scalar_lea.vmem %s2908_s8, 6144 }
  0x20   : > { %v3131_v39 = vpack.c.bf16 %v453_v29, %v450_v25  ;;  %v520_v40 = vand.u32 4294901760, %v519_v30  ;;  %v3782_v49 = vand.u32 4294901760, %v3127_v37  ;;  %v538_v51 = vand.u32 4294901760, %v3118_v31  ;;  %3810 = vst [vmem:[#allocation9_spill] sm:$0xff] %v3178_v60  ;;  %s2841_s26 = smul.u32 192, %s183_s23  ;;  %s3732_s15 = scalar_lea.sflag [#allocation3], %s183_s23 }
  0x21   : > { %2602 = vmatprep.subr.bf16.mxu1 %v3121_v33  ;;  %2650 = vmatprep.subr.bf16.mxu0 %v3121_v33  ;;  %v759_v50 = vand.u32 4294901760, %v3133_v41  ;;  %v3162_v52 = vpack.c.bf16 %v459_v35, %v456_v34  ;;  %v766_v53 = vand.u32 4294901760, %v3141_v44  ;;  %v3173_v57 = vsub.f32 %v3114_v28, %v528_v43 }
  0x22   : > { %2604 = vmatpush3.bf16.msra.mxu1 %v3121_v33  ;;  %2652 = vmatpush3.bf16.msra.mxu0 %v3121_v33  ;;  %v548_v59 = vand.u32 4294901760, %v3136_v42  ;;  %v3192_v63 = vpack.c.bf16 %v3782_v49, %v3783_v48  ;;  %v3197_v0 = vsub.f32 %v3118_v31, %v538_v51  ;;  %v3200_v1 = vsub.f32 %v390_v32, %v3145_v46  ;;  %v205_v32 = vld [vmem:[%s3779_s1 + $0x58] sm:$0xff]  ;;  %s3693_s27 = scalar_lea.vmem [#allocation2], %s2841_s26 }
  0x23   : > { %2606 = vmatprep.subr.bf16.mxu1 %v3131_v39  ;;  %2654 = vmatprep.subr.bf16.mxu0 %v3131_v39  ;;  %v760_v54 = vsub.f32 %v3133_v41, %v759_v50  ;;  %v767_v58 = vsub.f32 %v3141_v44, %v766_v53  ;;  %v3204_v4 = vand.u32 4294901760, %v393_v56  ;;  %v3207_v5 = vsub.f32 %v3103_v18, %v450_v25  ;;  %s2008_s29 = sshll.u32 %s3693_s27, 4  ;;  %s3726_s29 = int_to_ptr.vmem [resolvable:$true] %s2008_s29 }
  0x24   : > { %2305 = vmatprep.mubr.f32.mxu1 %v520_v40  ;;  %3811 = vst [vmem:[#allocation10_spill] sm:$0xff] %v3200_v1  ;;  %v558_v8 = vand.u32 4294901760, %v3167_v55  ;;  %v3213_v10 = vsub.f32 %v221_v24, %v453_v29  ;;  %v396_v11 = vsel %vm370_vm0, %v202_v61, 0  ;;  %v399_v15 = vsel %vm370_vm0, %v203_v62, 0  ;;  %v206_v40 = vld [vmem:[%s3779_s1 + $0x60] sm:$0xff]  ;;  %s2903_s6 = scalar_lea.vmem %s3726_s29, 3072  ;;  %p2910_p1 = scmp.lt.s32.totalorder %s3726_s29, %s2908_s8 }
  0x25   : > { %v761_v2 = vand.u32 4294901760, %v760_v54  ;;  %v768_v3 = vand.u32 4294901760, %v767_v58  ;;  %v2665_v16 = vpack.c.bf16 %v766_v53, %v759_v50  ;;  %v3220_v17 = vsub.f32 %v3136_v42, %v548_v59  ;;  %p2904_p12 = scmp.ne.s32.totalorder %s3726_s29, %s2903_s6  ;;  %p2911_p2 = scmp.lt.s32.totalorder %s2909_s9, %s2903_s6 }
  0x26   : > { %2608 = vmatpush3.bf16.msra.mxu1 %v3131_v39  ;;  %2656 = vmatpush3.bf16.msra.mxu0 %v3131_v39  ;;  %v3785_v18 = vand.u32 4294901760, %v3178_v60  ;;  %v773_v19 = vand.u32 4294901760, %v3207_v5  ;;  %v3784_v20 = vand.u32 4294901760, %v3200_v1  ;;  %v780_v21 = vand.u32 4294901760, %v3213_v10 }
  0x27   : > { %2610 = vmatprep.subr.bf16.mxu1 %v3162_v52  ;;  %2658 = vmatprep.subr.bf16.mxu0 %v3162_v52  ;;  %v3228_v22 = vand.u32 4294901760, %v396_v11  ;;  %v402_v23 = vsel %vm370_vm0, %v204_v6, 0  ;;  %v2617_v24 = vpack.c.bf16 %v768_v3, %v761_v2  ;;  %v3234_v25 = vsub.f32 %v393_v56, %v3204_v4  ;;  %p2905_p13 = pnand %p2904_p12, %p3047_p4  ;;  %p2912_p3 = por %p2911_p2, %p2910_p1 }
  0x28   : > { %v774_v29 = vsub.f32 %v3207_v5, %v773_v19  ;;  %v3237_v30 = vand.u32 4294901760, %v399_v15  ;;  %v530_v47 = vand.u32 4294901760, %v3173_v57  ;;  %v540_v50 = vand.u32 4294901760, %v3197_v0  ;;  %v207_v57 = vld [vmem:[%s3779_s1 + $0x68] sm:$0xff] }
  0x29   : > { %3812 = vst [vmem:[#allocation11_spill] sm:$0xff] %v3234_v25  ;;  %v781_v53 = vsub.f32 %v3213_v10, %v780_v21  ;;  %v559_v54 = vsub.f32 %v3167_v55, %v558_v8  ;;  %v3254_v56 = vsub.f32 %v3178_v60, %v3785_v18  ;;  %v3256_v61 = vand.u32 4294901760, %v402_v23  ;;  %p2906_p0 = pneg %p2905_p13 }
  0x2a   : > { %2612 = vmatpush3.bf16.msra.mxu1 %v3162_v52  ;;  %2660 = vmatpush3.bf16.msra.mxu0 %v3162_v52  ;;  %v775_v58 = vand.u32 4294901760, %v774_v29  ;;  %v3264_v0 = vsub.f32 %v396_v11, %v3228_v22  ;;  %v405_v2 = vsel %vm370_vm0, %v205_v32, 0  ;;  %v408_v3 = vsel %vm370_vm0, %v206_v40, 0 }
  0x2b   : > { %2614 = vmatprep.subr.bf16.mxu1 %v3192_v63  ;;  %2662 = vmatprep.subr.bf16.mxu0 %v3192_v63  ;;  %v782_v62 = vand.u32 4294901760, %v781_v53  ;;  %v550_v6 = vand.u32 4294901760, %v3220_v17  ;;  %v3272_v29 = vsub.f32 %v3200_v1, %v3784_v20  ;;  %v3786_v49 = vand.u32 4294901760, %v3234_v25  ;;  %p2913_p5 = pnand %p2912_p3, %p2906_p0 }
  0x2c   : > { %3813 = vst [vmem:[#allocation12_spill] sm:$0xff] %v3264_v0  ;;  %v3276_v53 = vsub.f32 %v399_v15, %v3237_v30  ;;  %v2669_v48 = vpack.c.bf16 %v780_v21, %v773_v19  ;;  %v411_v32 = vsel %vm370_vm0, %v207_v57, 0  ;;  %v3282_v40 = vsub.f32 %v3109_v26, %v456_v34  ;;  %v208_v19 = vld [vmem:[%s3779_s1 + $0x70] sm:$0xff]  ;;  %v209_v26 = vld [vmem:[%s3779_s1 + $0x78] sm:$0xff] }
  0x2d   : > { %v2621_v11 = vpack.c.bf16 %v782_v62, %v775_v58  ;;  %v560_v17 = vand.u32 4294901760, %v559_v54  ;;  %v3287_v20 = vsub.f32 %v402_v23, %v3256_v61  ;;  %v3289_v18 = vand.u32 4294901760, %v405_v2 }
  0x2e   : > { %2616 = vmatpush3.bf16.msra.mxu1 %v3192_v63  ;;  %2664 = vmatpush3.bf16.msra.mxu0 %v3192_v63  ;;  %3814 = vst [vmem:[#allocation13_spill] sm:$0xff] %v3276_v53  ;;  %v3291_v15 = vand.u32 4294901760, %v408_v3  ;;  %v570_v34 = vand.u32 4294901760, %v3254_v56  ;;  %v787_v21 = vand.u32 4294901760, %v3282_v40  ;;  %v3305_v23 = vsub.f32 %v3111_v27, %v459_v35 }
  0x2f   : > { %2618 = vmatprep.subr.bf16.mxu1 %v2617_v24  ;;  %2666 = vmatprep.subr.bf16.mxu0 %v2665_v16  ;;  %3815 = vst [vmem:[#allocation14_spill] sm:$0xff] %v3287_v20  ;;  %v3314_v54 = vand.u32 4294901760, %v411_v32  ;;  %v414_v35 = vsel %vm370_vm0, %v208_v19, 0  ;;  %v3327_v57 = vsub.f32 %v405_v2, %v3289_v18  ;;  %v211_v19 = vld [vmem:[%s3779_s1 + $0x88] sm:$0xff] }
  0x30   : > { %v788_v56 = vsub.f32 %v3282_v40, %v787_v21  ;;  %v794_v27 = vand.u32 4294901760, %v3305_v23  ;;  %v3330_v62 = vsub.f32 %v408_v3, %v3291_v15 }
  0x31   : > { %2306 = vmatmul.mubr.f32.vlgmr.msra.gmra.mrb[0].mxu1 %v530_v47  ;;  %2462 = vmatmul.mubr.f32.vlgmr.msra.gmra.mrb[0].mxu0 %v528_v43  ;;  %v3787_v43 = vand.u32 4294901760, %v3264_v0  ;;  %v580_v47 = vand.u32 4294901760, %v3272_v29  ;;  %v3332_v29 = vand.u32 4294901760, %v414_v35 }
  0x32   : > { %2620 = vmatpush3.bf16.msra.mxu1 %v2617_v24  ;;  %2308 = vmatprep.mubr.f32.mxu1 %v540_v50  ;;  %v589_v24 = vsub.f32 %v3234_v25, %v3786_v49  ;;  %v3788_v50 = vand.u32 4294901760, %v3276_v53  ;;  %v795_v2 = vsub.f32 %v3305_v23, %v794_v27  ;;  %v3344_v49 = vsub.f32 %v411_v32, %v3314_v54 }
  0x33   : > { %2464 = vmatprep.mubr.f32.mxu0 %v538_v51  ;;  %2668 = vmatpush3.bf16.msra.mxu0 %v2665_v16  ;;  %v417_v51 = vsel %vm370_vm0, %v209_v26, 0  ;;  %v210_v16 = vld [vmem:[%s3779_s1 + $0x80] sm:$0xff]  ;;  %v2673_v26 = vpack.c.bf16 %v794_v27, %v787_v21  ;;  %v3816_v32 = vand.u32 4294901760, %v3178_v60  ;;  %v3817_v21 = vand.u32 4294901760, %v3287_v20 }
  0x34   : > { %2622 = vmatprep.subr.bf16.mxu1 %v2621_v11  ;;  %2670 = vmatprep.subr.bf16.mxu0 %v2669_v48  ;;  %v590_v3 = vand.u32 4294901760, %v589_v24  ;;  %v3346_v58 = vand.u32 4294901760, %v417_v51 }
  0x35   : > { %2309 = vmatmul.mubr.f32.gmra.mrb[2].mxu1 %v550_v6  ;;  %2465 = vmatmul.mubr.f32.gmra.mrb[2].mxu0 %v548_v59  ;;  %v599_v59 = vsub.f32 %v3264_v0, %v3787_v43  ;;  %v789_v6 = vand.u32 4294901760, %v788_v56  ;;  %v609_v56 = vsub.f32 %v3276_v53, %v3788_v50  ;;  %v796_v43 = vand.u32 4294901760, %v795_v2 }
  0x36   : > { %2311 = vmatprep.mubr.f32.mxu1 %v560_v17  ;;  %2467 = vmatprep.mubr.f32.mxu0 %v558_v8  ;;  %v420_v17 = vsel %vm370_vm0, %v210_v16, 0  ;;  %v212_v8 = vld [vmem:[%s3779_s1 + $0x90] sm:$0xff]  ;;  %v619_v24 = vsub.f32 %v3287_v20, %v3817_v21  ;;  %v3818_v2 = vand.u32 4294901760, %v3125_v36  ;;  %v3378_v27 = vsub.f32 %v417_v51, %v3346_v58  ;;  %v214_v51 = vld [vmem:[%s3779_s1 + $0xa0] sm:$0xff] }
  0x37   : > { %2624 = vmatpush3.bf16.msra.mxu1 %v2621_v11  ;;  %2672 = vmatpush3.bf16.msra.mxu0 %v2669_v48  ;;  %v3356_v11 = vsub.f32 %v414_v35, %v3332_v29  ;;  %v423_v48 = vsel %vm370_vm0, %v211_v19, 0  ;;  %v3365_v16 = vand.u32 4294901760, %v420_v17  ;;  %v3819_v35 = vand.u32 4294901760, %v3200_v1 }
  0x38   : > { %2674 = vmatprep.subr.bf16.mxu0 %v2673_v26  ;;  %v3370_v50 = vsub.f32 %v3125_v36, %v3818_v2  ;;  %v3793_v19 = vand.u32 4294901760, %v3330_v62  ;;  %v426_v60 = vsel %vm370_vm0, %v212_v8, 0  ;;  %v3380_v55 = vand.u32 4294901760, %v423_v48  ;;  %v213_v36 = vld [vmem:[%s3779_s1 + $0x98] sm:$0xff] }
  0x39   : > { %2312 = vmatmul.mubr.f32.gmra.mrb[4].mxu1 %v570_v34  ;;  %2468 = vmatmul.mubr.f32.gmra.mrb[4].mxu0 %v3816_v32  ;;  %v600_v34 = vand.u32 4294901760, %v599_v59  ;;  %v2625_v32 = vpack.c.bf16 %v796_v43, %v789_v6  ;;  %v610_v59 = vand.u32 4294901760, %v609_v56  ;;  %v3820_v6 = vand.u32 4294901760, %v3127_v37 }
  0x3a   : > { %2314 = vmatprep.mubr.f32.mxu1 %v580_v47  ;;  %2470 = vmatprep.mubr.f32.mxu0 %v3819_v35  ;;  %v801_v47 = vand.u32 4294901760, %v3370_v50  ;;  %v3822_v2 = vand.u32 4294901760, %v3327_v57  ;;  %v3401_v35 = vsub.f32 %v420_v17, %v3365_v16  ;;  %v3403_v43 = vand.u32 4294901760, %v426_v60 }
  0x3b   : > { %2676 = vmatpush3.bf16.msra.mxu0 %v2673_v26  ;;  %2626 = vmatprep.subr.bf16.mxu1 %v2625_v32  ;;  %v3390_v8 = vsub.f32 %v3127_v37, %v3820_v6  ;;  %v3821_v26 = vand.u32 4294901760, %v3234_v25  ;;  %v3824_v6 = vand.u32 4294901760, %v3264_v0  ;;  %v620_v21 = vand.u32 4294901760, %v619_v24 }
  0x3c   : > { %v629_v56 = vsub.f32 %v3327_v57, %v3822_v2  ;;  %3823 = vst [vmem:[#allocation15_spill] sm:$0xff] %v3401_v35  ;;  %v802_v37 = vsub.f32 %v3370_v50, %v801_v47  ;;  %v3825_v17 = vand.u32 4294901760, %v3344_v49  ;;  %2628 = vmatpush3.bf16.msra.mxu1 %v2625_v32  ;;  %v432_v24 = vsel %vm370_vm0, %v214_v51, 0  ;;  %v216_v32 = vld [vmem:[%s3779_s1 + $0xb0] sm:$0xff] }
  0x3d   : > { %2315 = vmatmul.mubr.f32.gmra.mrb[6].mxu1 %v590_v3  ;;  %2471 = vmatmul.mubr.f32.gmra.mrb[6].mxu0 %v3821_v26  ;;  %v639_v3 = vsub.f32 %v3330_v62, %v3793_v19  ;;  %v429_v26 = vsel %vm370_vm0, %v213_v36, 0  ;;  %v808_v2 = vand.u32 4294901760, %v3390_v8  ;;  %v3827_v36 = vand.u32 4294901760, %v3356_v11 }
  0x3e   : > { %2317 = vmatprep.mubr.f32.mxu1 %v600_v34  ;;  %2473 = vmatprep.mubr.f32.mxu0 %v3824_v6  ;;  %v649_v25 = vsub.f32 %v3344_v49, %v3825_v17  ;;  %v3418_v34 = vsub.f32 %v423_v48, %v3380_v55  ;;  %v215_v6 = vld [vmem:[%s3779_s1 + $0xa8] sm:$0xff]  ;;  %v803_v0 = vand.u32 4294901760, %v802_v37  ;;  %v3828_v48 = vand.u32 4294901760, %v3276_v53 }
  0x3f   : > { %v659_v19 = vsub.f32 %v3356_v11, %v3827_v36  ;;  %v809_v42 = vsub.f32 %v3390_v8, %v808_v2  ;;  %v2677_v17 = vpack.c.bf16 %v808_v2, %v801_v47  ;;  %v630_v51 = vand.u32 4294901760, %v629_v56 }
  0x40   : > { %3826 = vst [vmem:[#allocation16_spill] sm:$0xff] %v3418_v34  ;;  %v678_v1 = vand.u32 4294901760, %v3401_v35  ;;  %v3435_v31 = vsub.f32 %v426_v60, %v3403_v43  ;;  %v3437_v28 = vand.u32 4294901760, %v429_v26  ;;  %v3830_v37 = vand.u32 4294901760, %v3287_v20  ;;  %v217_v60 = vld [vmem:[%s3779_s1 + $0xb8] sm:$0xff] }
  0x41   : > { %2318 = vmatmul.mubr.f32.gmra.mrb[8].mxu1 %v610_v59  ;;  %2474 = vmatmul.mubr.f32.gmra.mrb[8].mxu0 %v3828_v48  ;;  %v640_v47 = vand.u32 4294901760, %v639_v3  ;;  %v810_v2 = vand.u32 4294901760, %v809_v42  ;;  %v3441_v36 = vand.u32 4294901760, %v432_v24  ;;  %v435_v59 = vsel %vm370_vm0, %v215_v6, 0 }
  0x42   : > { %3829 = vst [vmem:[#allocation17_spill] sm:$0xff] %v3435_v31  ;;  %2320 = vmatprep.mubr.f32.mxu1 %v620_v21  ;;  %2476 = vmatprep.mubr.f32.mxu0 %v3830_v37  ;;  %v650_v53 = vand.u32 4294901760, %v649_v25  ;;  %v438_v56 = vsel %vm370_vm0, %v216_v32, 0  ;;  %v660_v48 = vand.u32 4294901760, %v659_v19  ;;  %v3831_v21 = vand.u32 4294901760, %v3378_v27 }
  0x43   : > { %2678 = vmatprep.subr.bf16.mxu0 %v2677_v17  ;;  %v688_v3 = vand.u32 4294901760, %v3418_v34  ;;  %v2629_v42 = vpack.c.bf16 %v810_v2, %v803_v0  ;;  %v3832_v6 = vand.u32 4294901760, %v3327_v57  ;;  %v679_v25 = vsub.f32 %v3401_v35, %v678_v1 }
  0x44   : > { %v669_v20 = vsub.f32 %v3378_v27, %v3831_v21  ;;  %2680 = vmatpush3.bf16.msra.mxu0 %v2677_v17  ;;  %v698_v32 = vand.u32 4294901760, %v3435_v31  ;;  %v3457_v37 = vsub.f32 %v429_v26, %v3437_v28  ;;  %v3459_v19 = vand.u32 4294901760, %v435_v59 }
  0x45   : > { %2321 = vmatmul.mubr.f32.gmra.mrb[10].mxu1 %v630_v51  ;;  %2477 = vmatmul.mubr.f32.gmra.mrb[10].mxu0 %v3832_v6  ;;  %v3834_v21 = vand.u32 4294901760, %v3330_v62  ;;  %v3464_v0 = vsub.f32 %v432_v24, %v3441_v36  ;;  %v3466_v17 = vand.u32 4294901760, %v438_v56  ;;  %v441_v51 = vsel %vm370_vm0, %v217_v60, 0 }
  0x46   : > { %3833 = vst [vmem:[#allocation18_spill] sm:$0xff] %v3457_v37  ;;  %2323 = vmatprep.mubr.f32.mxu1 %v640_v47  ;;  %2630 = vmatprep.subr.bf16.mxu1 %v2629_v42  ;;  %v3471_v2 = vpack.c.bf16 %v3141_v44, %v3133_v41  ;;  %v670_v26 = vand.u32 4294901760, %v669_v20  ;;  %v2983_v47 = vmov 0   ;;  %v3835_v6 = vand.u32 4294901760, %v3344_v49  ;;  %v228_v41 = vld [vmem:[%s3780_s2 + $0x10] sm:$0xff]  ;;  %v226_v44 = vld [vmem:[%s3780_s2] sm:$0xff] }
  0x47   : > { %2479 = vmatprep.mubr.f32.mxu0 %v3834_v21  ;;  %2682 = vmatprep.subr.bf16.mxu0 %v3121_v33  ;;  %v689_v24 = vsub.f32 %v3418_v34, %v688_v3  ;;  %v708_v21 = vand.u32 4294901760, %v3457_v37  ;;  %v3479_v60 = vsub.f32 %v435_v59, %v3459_v19  ;;  %v3481_v35 = vand.u32 4294901760, %v441_v51 }
  0x48   : > { %2632 = vmatpush3.bf16.msra.mxu1 %v2629_v42  ;;  %2902 = vset.pattern.permute.xlu1 %v2983_v47  ;;  %v3836_v20 = vand.u32 4294901760, %v3356_v11  ;;  %v699_v42 = vsub.f32 %v3435_v31, %v698_v32  ;;  %v718_v59 = vand.u32 4294901760, %v3464_v0  ;;  %v3837_v34 = vand.u32 4294901760, %v3378_v27 }
  0x49   : > { %2324 = vmatmul.mubr.f32.gmra.mrb[12].mxu1 %v650_v53  ;;  %2480 = vmatmul.mubr.f32.gmra.mrb[12].mxu0 %v3835_v6  ;;  %v680_v53 = vand.u32 4294901760, %v679_v25  ;;  %v3494_v6 = vsub.f32 %v438_v56, %v3466_v17  ;;  %v728_v25 = vand.u32 4294901760, %v3479_v60  ;;  %v3502_v31 = vsub.f32 %v441_v51, %v3481_v35  ;;  %v229_v56 = vld [vmem:[%s3780_s2 + $0x18] sm:$0xff] }
  0x4a   : > { %2326 = vmatprep.mubr.f32.mxu1 %v660_v48  ;;  %2482 = vmatprep.mubr.f32.mxu0 %v3836_v20  ;;  %v690_v48 = vand.u32 4294901760, %v689_v24  ;;  %v709_v20 = vsub.f32 %v3457_v37, %v708_v21  ;;  %v231_v37 = vld [vmem:[%s3780_s2 + $0x28] sm:$0xff] }
  0x4b   : > { %2634 = vmatprep.subr.bf16.mxu1 %v3471_v2  ;;  %2901 = vset.pattern.permute.xlu0 %v2983_v47  ;;  %v227_v47 = vld [vmem:[%s3780_s2 + $0x8] sm:$0xff]  ;;  %v738_v24 = vand.u32 4294901760, %v3494_v6 }
  0x4c   : > { %262 = vperm.xlu1 %2902, %v228_v41   ;;  %252 = vperm.xlu0 %2901, %v226_v44   ;;  %v710_v51 = vand.u32 4294901760, %v709_v20  ;;  %v729_v41 = vsub.f32 %v3479_v60, %v728_v25  ;;  %v748_v44 = vand.u32 4294901760, %v3502_v31  ;;  %v233_v20 = vld [vmem:[%s3780_s2 + $0x38] sm:$0xff] }
  0x4d   : > { %2327 = vmatmul.mubr.f32.gmra.mrb[14].mxu1 %v670_v26  ;;  %2483 = vmatmul.mubr.f32.gmra.mrb[14].mxu0 %v3837_v34  ;;  %v700_v26 = vand.u32 4294901760, %v699_v42  ;;  %v719_v34 = vsub.f32 %v3464_v0, %v718_v59  ;;  %v739_v42 = vsub.f32 %v3494_v6, %v738_v24 }
  0x4e   : > { %2329 = vmatprep.mubr.f32.mxu1 %v680_v53  ;;  %2485 = vmatprep.mubr.f32.mxu0 %v678_v1  ;;  %v230_v1 = vld [vmem:[%s3780_s2 + $0x20] sm:$0xff] }
  0x4f   : > { %v720_v53 = vand.u32 4294901760, %v719_v34  ;;  %v246_v34 = vld [vmem:[%s3780_s2 + $0xa0] sm:$0xff] }
  0x50   : > { %267 = vperm.xlu1 %2902, %v229_v56   ;;  %257 = vperm.xlu0 %2901, %v227_v47   ;;  %v232_v56 = vld [vmem:[%s3780_s2 + $0x30] sm:$0xff]  ;;  %v234_v47 = vld [vmem:[%s3780_s2 + $0x40] sm:$0xff] }
  0x51   : > { %2330 = vmatmul.mubr.f32.gmra.mrb[16].mxu1 %v690_v48  ;;  %2486 = vmatmul.mubr.f32.gmra.mrb[16].mxu0 %v688_v3  ;;  %v730_v3 = vand.u32 4294901760, %v729_v41  ;;  %v749_v48 = vsub.f32 %v3502_v31, %v748_v44  ;;  %v3838_v41 = vld [vmem:[#allocation5_spill] sm:$0xff] }
  0x52   : > { %2332 = vmatprep.mubr.f32.mxu1 %v700_v26  ;;  %2488 = vmatprep.mubr.f32.mxu0 %v698_v32  ;;  %v740_v32 = vand.u32 4294901760, %v739_v42  ;;  %v2637_v26 = vpack.c.bf16 %v3213_v10, %v3207_v5  ;;  %v2641_v5 = vpack.c.bf16 %v3305_v23, %v3282_v40  ;;  %v238_v10 = vld [vmem:[%s3780_s2 + $0x60] sm:$0xff]  ;;  %v240_v40 = vld [vmem:[%s3780_s2 + $0x70] sm:$0xff] }
  0x53   : > { %v242_v23 = vld [vmem:[%s3780_s2 + $0x80] sm:$0xff] }
  0x54   : > { %277 = vperm.xlu1 %2902, %v231_v37   ;;  %272 = vperm.xlu0 %2901, %v230_v1   ;;  %v750_v37 = vand.u32 4294901760, %v749_v48  ;;  %v3840_v1 = vld [vmem:[#allocation7_spill] sm:$0xff]  ;;  %v3842_v42 = vld [vmem:[#allocation9_spill] sm:$0xff] }
  0x55   : > { %2333 = vmatmul.mubr.f32.gmra.mrb[18].mxu1 %v710_v51  ;;  %2489 = vmatmul.mubr.f32.gmra.mrb[18].mxu0 %v708_v21  ;;  %v235_v21 = vld [vmem:[%s3780_s2 + $0x48] sm:$0xff]  ;;  %v248_v51 = vld [vmem:[%s3780_s2 + $0xb0] sm:$0xff] }
  0x56   : > { %2335 = vmatprep.mubr.f32.mxu1 %v720_v53  ;;  %2491 = vmatprep.mubr.f32.mxu0 %v718_v59  ;;  %v237_v59 = vld [vmem:[%s3780_s2 + $0x58] sm:$0xff] }
  0x57   : > { %v3841_v53 = vld [vmem:[#allocation8_spill] sm:$0xff] }
  0x58   : > { %287 = vperm.xlu1 %2902, %v233_v20   ;;  %282 = vperm.xlu0 %2901, %v232_v56  }
  0x59   : > { %2336 = vmatmul.mubr.f32.gmra.mrb[20].mxu1 %v730_v3  ;;  %2492 = vmatmul.mubr.f32.gmra.mrb[20].mxu0 %v728_v25  ;;  %v236_v25 = vld [vmem:[%s3780_s2 + $0x50] sm:$0xff] }
  0x5a   : > { %2338 = vmatprep.mubr.f32.mxu1 %v740_v32  ;;  %2494 = vmatprep.mubr.f32.mxu0 %v738_v24  ;;  %v249_v24 = vld [vmem:[%s3780_s2 + $0xb8] sm:$0xff] }
  0x5c   : > { %297 = vperm.xlu1 %2902, %v235_v21   ;;  %292 = vperm.xlu0 %2901, %v234_v47  }
  0x5d   : > { %2339 = vmatmul.mubr.f32.gmra.mrb[22].mxu1 %v750_v37  ;;  %2495 = vmatmul.mubr.f32.gmra.mrb[22].mxu0 %v748_v44  ;;  %v3839_v44 = vld [vmem:[#allocation6_spill] sm:$0xff] }
  0x5e   : > { %2357 = vmatprep.mubr.f32.mxu1 %v3079_v7  ;;  %2513 = vmatprep.mubr.f32.mxu0 %v3079_v7 }
  0x60   : > { %307 = vperm.xlu1 %2902, %v237_v59   ;;  %302 = vperm.xlu0 %2901, %v236_v25  }
  0x61   : > { %2358 = vmatmul.mubr.f32.vlgmr.msra.gmra.mrb[0].mxu1 %v3082_v9  ;;  %2514 = vmatmul.mubr.f32.vlgmr.msra.gmra.mrb[0].mxu0 %v3082_v9 }
  0x62   : > { %2636 = vmatpush3.bf16.msra.mxu1 %v3471_v2  ;;  %2360 = vmatprep.mubr.f32.mxu1 %v3093_v13  ;;  %v247_v2 = vld [vmem:[%s3780_s2 + $0xa8] sm:$0xff] }
  0x63   : > { %2516 = vmatprep.mubr.f32.mxu0 %v3093_v13  ;;  %2684 = vmatpush3.bf16.msra.mxu0 %v3121_v33  ;;  %v2645_v33 = vpack.c.bf16 %v3390_v8, %v3370_v50  ;;  %v245_v50 = vld [vmem:[%s3780_s2 + $0x98] sm:$0xff]  ;;  %v244_v8 = vld [vmem:[%s3780_s2 + $0x90] sm:$0xff] }
  0x64   : > { %2638 = vmatprep.subr.bf16.mxu1 %v2637_v26  ;;  %2686 = vmatprep.subr.bf16.mxu0 %v3131_v39 }
  0x65   : > { %2361 = vmatmul.mubr.f32.gmra.mrb[2].mxu1 %v3098_v14  ;;  %2517 = vmatmul.mubr.f32.gmra.mrb[2].mxu0 %v3098_v14 }
  0x66   : > { %2363 = vmatprep.mubr.f32.mxu1 %v3129_v38  ;;  %2519 = vmatprep.mubr.f32.mxu0 %v3129_v38 }
  0x67   : > { %2640 = vmatpush3.bf16.msra.mxu1 %v2637_v26  ;;  %2688 = vmatpush3.bf16.msra.mxu0 %v3131_v39  ;;  %v239_v39 = vld [vmem:[%s3780_s2 + $0x68] sm:$0xff] }
  0x68   : > { %2642 = vmatprep.subr.bf16.mxu1 %v2641_v5  ;;  %2690 = vmatprep.subr.bf16.mxu0 %v3162_v52 }
  0x69   : > { %2364 = vmatmul.mubr.f32.gmra.mrb[4].mxu1 %v3143_v45  ;;  %2520 = vmatmul.mubr.f32.gmra.mrb[4].mxu0 %v3143_v45 }
  0x6a   : > { %2366 = vmatprep.mubr.f32.mxu1 %v3145_v46  ;;  %2522 = vmatprep.mubr.f32.mxu0 %v3145_v46 }
  0x6b   : > { %2644 = vmatpush3.bf16.msra.mxu1 %v2641_v5  ;;  %2692 = vmatpush3.bf16.msra.mxu0 %v3162_v52  ;;  %v241_v52 = vld [vmem:[%s3780_s2 + $0x78] sm:$0xff] }
  0x6c   : > { %2646 = vmatprep.subr.bf16.mxu1 %v2645_v33  ;;  %2694 = vmatprep.subr.bf16.mxu0 %v3192_v63 }
  0x6d   : > { %2367 = vmatmul.mubr.f32.gmra.mrb[6].mxu1 %v3204_v4  ;;  %2523 = vmatmul.mubr.f32.gmra.mrb[6].mxu0 %v3204_v4 }
  0x6e   : > { %2369 = vmatprep.mubr.f32.mxu1 %v3228_v22  ;;  %2525 = vmatprep.mubr.f32.mxu0 %v3228_v22 }
  0x6f   : > { %2648 = vmatpush3.bf16.msra.mxu1 %v2645_v33  ;;  %2696 = vmatpush3.bf16.msra.mxu0 %v3192_v63  ;;  %v243_v63 = vld [vmem:[%s3780_s2 + $0x88] sm:$0xff] }
  0x70   : > { %317 = vperm.xlu1 %2902, %v239_v39   ;;  %312 = vperm.xlu0 %2901, %v238_v10  }
  0x71   : > { %2370 = vmatmul.mubr.f32.gmra.mrb[8].mxu1 %v3237_v30  ;;  %2526 = vmatmul.mubr.f32.gmra.mrb[8].mxu0 %v3237_v30 }
  0x72   : > { %2372 = vmatprep.mubr.f32.mxu1 %v3256_v61  ;;  %2528 = vmatprep.mubr.f32.mxu0 %v3256_v61 }
  0x74   : > { %327 = vperm.xlu1 %2902, %v241_v52   ;;  %322 = vperm.xlu0 %2901, %v240_v40  }
  0x75   : > { %2373 = vmatmul.mubr.f32.gmra.mrb[10].mxu1 %v3289_v18  ;;  %2529 = vmatmul.mubr.f32.gmra.mrb[10].mxu0 %v3289_v18 }
  0x76   : > { %2375 = vmatprep.mubr.f32.mxu1 %v3291_v15  ;;  %2531 = vmatprep.mubr.f32.mxu0 %v3291_v15 }
  0x78   : > { %337 = vperm.xlu1 %2902, %v243_v63   ;;  %332 = vperm.xlu0 %2901, %v242_v23  }
  0x79   : > { %2376 = vmatmul.mubr.f32.gmra.mrb[12].mxu1 %v3314_v54  ;;  %2532 = vmatmul.mubr.f32.gmra.mrb[12].mxu0 %v3314_v54 }
  0x7a   : > { %2378 = vmatprep.mubr.f32.mxu1 %v3332_v29  ;;  %2534 = vmatprep.mubr.f32.mxu0 %v3332_v29 }
  0x7c   : > { %347 = vperm.xlu1 %2902, %v245_v50   ;;  %342 = vperm.xlu0 %2901, %v244_v8  }
  0x7d   : > { %2379 = vmatmul.mubr.f32.gmra.mrb[14].mxu1 %v3346_v58  ;;  %2535 = vmatmul.mubr.f32.gmra.mrb[14].mxu0 %v3346_v58 }
  0x7e   : > { %2381 = vmatprep.mubr.f32.mxu1 %v3365_v16  ;;  %2537 = vmatprep.mubr.f32.mxu0 %v3365_v16 }
  0x80   : > { %357 = vperm.xlu1 %2902, %v247_v2   ;;  %352 = vperm.xlu0 %2901, %v246_v34  }
  0x81   : > { %2382 = vmatmul.mubr.f32.gmra.mrb[16].mxu1 %v3380_v55  ;;  %2538 = vmatmul.mubr.f32.gmra.mrb[16].mxu0 %v3380_v55 }
  0x82   : > { %2384 = vmatprep.mubr.f32.mxu1 %v3403_v43  ;;  %2540 = vmatprep.mubr.f32.mxu0 %v3403_v43 }
  0x84   : > { %367 = vperm.xlu1 %2902, %v249_v24   ;;  %362 = vperm.xlu0 %2901, %v248_v51  }
  0x85   : > { %2385 = vmatmul.mubr.f32.gmra.mrb[18].mxu1 %v3437_v28  ;;  %2541 = vmatmul.mubr.f32.gmra.mrb[18].mxu0 %v3437_v28 }
  0x86   : > { %2387 = vmatprep.mubr.f32.mxu1 %v3441_v36  ;;  %2543 = vmatprep.mubr.f32.mxu0 %v3441_v36 }
  0x89   : > { %2388 = vmatmul.mubr.f32.gmra.mrb[20].mxu1 %v3459_v19  ;;  %2544 = vmatmul.mubr.f32.gmra.mrb[20].mxu0 %v3459_v19 }
  0x8a   : > { %2390 = vmatprep.mubr.f32.mxu1 %v3466_v17  ;;  %2546 = vmatprep.mubr.f32.mxu0 %v3466_v17 }
  0x8d   : > { %2391 = vmatmul.mubr.f32.gmra.mrb[22].mxu1 %v3481_v35  ;;  %2547 = vmatmul.mubr.f32.gmra.mrb[22].mxu0 %v3481_v35 }
  0x8e   : > { %2409 = vmatprep.mubr.f32.mxu1 %v3091_v12  ;;  %2565 = vmatprep.mubr.f32.mxu0 %v3079_v7  ;;  %v3843_v7 = vld [vmem:[#allocation10_spill] sm:$0xff]  ;;  %v3845_v12 = vld [vmem:[#allocation12_spill] sm:$0xff] }
  0x91   : > { %2410 = vmatmul.mubr.f32.vlgmr.msra.gmra.mrb[0].mxu1 %v3838_v41  ;;  %2566 = vmatmul.mubr.f32.vlgmr.msra.gmra.mrb[0].mxu0 %v3082_v9  ;;  %v3844_v9 = vld [vmem:[#allocation11_spill] sm:$0xff] }
  0x92   : > { %2412 = vmatprep.mubr.f32.mxu1 %v3839_v44  ;;  %2568 = vmatprep.mubr.f32.mxu0 %v3093_v13  ;;  %v3846_v13 = vld [vmem:[#allocation13_spill] sm:$0xff] }
  0x95   : > { %2413 = vmatmul.mubr.f32.gmra.mrb[2].mxu1 %v3840_v1  ;;  %2569 = vmatmul.mubr.f32.gmra.mrb[2].mxu0 %v3098_v14  ;;  %v3847_v14 = vld [vmem:[#allocation14_spill] sm:$0xff] }
  0x96   : > { %2415 = vmatprep.mubr.f32.mxu1 %v3841_v53  ;;  %2571 = vmatprep.mubr.f32.mxu0 %v3129_v38  ;;  %v3848_v38 = vld [vmem:[#allocation15_spill] sm:$0xff] }
  0x99   : > { %2416 = vmatmul.mubr.f32.gmra.mrb[4].mxu1 %v3842_v42  ;;  %2572 = vmatmul.mubr.f32.gmra.mrb[4].mxu0 %v3143_v45  ;;  %v3849_v45 = vld [vmem:[#allocation16_spill] sm:$0xff] }
  0x9a   : > { %2418 = vmatprep.mubr.f32.mxu1 %v3843_v7  ;;  %2574 = vmatprep.mubr.f32.mxu0 %v3145_v46  ;;  %v3850_v46 = vld [vmem:[#allocation17_spill] sm:$0xff] }
  0x9d   : > { %2419 = vmatmul.mubr.f32.gmra.mrb[6].mxu1 %v3844_v9  ;;  %2575 = vmatmul.mubr.f32.gmra.mrb[6].mxu0 %v3204_v4 }
  0x9e   : > { %2421 = vmatprep.mubr.f32.mxu1 %v3845_v12  ;;  %2577 = vmatprep.mubr.f32.mxu0 %v3228_v22 }
  0xa1   : > { %2422 = vmatmul.mubr.f32.gmra.mrb[8].mxu1 %v3846_v13  ;;  %2578 = vmatmul.mubr.f32.gmra.mrb[8].mxu0 %v3237_v30 }
  0xa2   : > { %2424 = vmatprep.mubr.f32.mxu1 %v3847_v14  ;;  %2580 = vmatprep.mubr.f32.mxu0 %v3256_v61 }
  0xa5   : > { %2425 = vmatmul.mubr.f32.gmra.mrb[10].mxu1 %v3327_v57  ;;  %2581 = vmatmul.mubr.f32.gmra.mrb[10].mxu0 %v3289_v18 }
  0xa6   : > { %2427 = vmatprep.mubr.f32.mxu1 %v3330_v62  ;;  %2583 = vmatprep.mubr.f32.mxu0 %v3291_v15 }
  0xa9   : > { %2428 = vmatmul.mubr.f32.gmra.mrb[12].mxu1 %v3344_v49  ;;  %2584 = vmatmul.mubr.f32.gmra.mrb[12].mxu0 %v3314_v54  ;;  %v3851_v49 = vld [vmem:[#allocation18_spill] sm:$0xff] }
  0xaa   : > { %2430 = vmatprep.mubr.f32.mxu1 %v3356_v11  ;;  %2586 = vmatprep.mubr.f32.mxu0 %v3332_v29 }
  0xad   : > { %2431 = vmatmul.mubr.f32.gmra.mrb[14].mxu1 %v3378_v27  ;;  %2587 = vmatmul.mubr.f32.gmra.mrb[14].mxu0 %v3346_v58 }
  0xae   : > { %2433 = vmatprep.mubr.f32.mxu1 %v3848_v38  ;;  %2589 = vmatprep.mubr.f32.mxu0 %v3365_v16 }
  0xb1   : > { %2434 = vmatmul.mubr.f32.gmra.mrb[16].mxu1 %v3849_v45  ;;  %2590 = vmatmul.mubr.f32.gmra.mrb[16].mxu0 %v3380_v55 }
  0xb2   : > { %2436 = vmatprep.mubr.f32.mxu1 %v3850_v46  ;;  %2592 = vmatprep.mubr.f32.mxu0 %v3403_v43 }
  0xb5   : > { %2437 = vmatmul.mubr.f32.gmra.mrb[18].mxu1 %v3851_v49  ;;  %2593 = vmatmul.mubr.f32.gmra.mrb[18].mxu0 %v3437_v28 }
  0xb6   : > { %2439 = vmatprep.mubr.f32.mxu1 %v3464_v0  ;;  %2595 = vmatprep.mubr.f32.mxu0 %v3441_v36 }
  0xb9   : > { %2440 = vmatmul.mubr.f32.gmra.mrb[20].mxu1 %v3479_v60  ;;  %2596 = vmatmul.mubr.f32.gmra.mrb[20].mxu0 %v3459_v19 }
  0xba   : > { %2442 = vmatprep.mubr.f32.mxu1 %v3494_v6  ;;  %2598 = vmatprep.mubr.f32.mxu0 %v3466_v17 }
  0xbd   : > { %2443 = vmatmul.mubr.f32.gmra.mrb[22].mxu1 %v3502_v31  ;;  %2599 = vmatmul.mubr.f32.gmra.mrb[22].mxu0 %v3481_v35 }
  0xcb   : > { %v263_v55 = vpop.permute.xlu1 %262  ;;  %v253_v28 = vpop.permute.xlu0 %252 }
  0xcf   : > { %v268_v4 = vpop.permute.xlu1 %267  ;;  %v258_v18 = vpop.permute.xlu0 %257 }
  0xd3   : > { %v278_v22 = vpop.permute.xlu1 %277  ;;  %v273_v30 = vpop.permute.xlu0 %272 }
  0xd7   : > { %v288_v61 = vpop.permute.xlu1 %287  ;;  %v283_v15 = vpop.permute.xlu0 %282 }
  0xdb   : > { %v298_v54 = vpop.permute.xlu1 %297  ;;  %v293_v58 = vpop.permute.xlu0 %292 }
  0xdf   : > { %v308_v57 = vpop.permute.xlu1 %307  ;;  %v3687_v62 = vpop.permute.xlu0 %302 }
  0xef   : > { %v318_v35 = vpop.permute.xlu1 %317  ;;  %v3691_v36 = vpop.permute.xlu0 %312 }
  0xf3   : > { %v328_v5 = vpop.permute.xlu1 %327  ;;  %v323_v33 = vpop.permute.xlu0 %322 }
  0xf7   : > { %v338_v42 = vpop.permute.xlu1 %337  ;;  %v333_v7 = vpop.permute.xlu0 %332 }
 0x164   : > { %v2411_v29 = vpop.f32.mrb[0].mxu1  ;;  %v2567_v31 = vpop.f32.mrb[0].mxu0 }
 0x165   : > { %v2697_v11 = vadd.f32 %v2411_v29, %v258_v18  ;;  %v1089_v27 = vpop.f32.mrb[1].mxu1  ;;  %v1827_v16 = vpop.f32.mrb[1].mxu0 }
 0x166   : > { %v2699_v43 = vadd.f32 %v1089_v27, %v253_v28 }
 0x167   : > { %v2698_v19 = vadd.f32 %v2697_v11, %v2567_v31 }
 0x168   : > { %v2700_v0 = vadd.f32 %v2699_v43, %v1827_v16  ;;  %v2414_v17 = vpop.f32.mrb[2].mxu1  ;;  %v2570_v60 = vpop.f32.mrb[2].mxu0 }
 0x169   : > { %1970 = vst [vmem:[%s3693_s27 + $0x8] sm:$0xff] %v2698_v19  ;;  %v2701_v6 = vadd.f32 %v2414_v17, %v268_v4  ;;  %v1103_v3 = vpop.f32.mrb[3].mxu1  ;;  %v1839_v48 = vpop.f32.mrb[3].mxu0 }
 0x16a   : > { %1969 = vst [vmem:[%s3693_s27] sm:$0xff] %v2700_v0  ;;  %v2703_v20 = vadd.f32 %v1103_v3, %v263_v55 }
 0x16b   : > { %v2702_v56 = vadd.f32 %v2701_v6, %v2570_v60 }
 0x16c   : > { %v2704_v32 = vadd.f32 %v2703_v20, %v1839_v48  ;;  %v2417_v37 = vpop.f32.mrb[4].mxu1  ;;  %v2573_v21 = vpop.f32.mrb[4].mxu0 }
 0x16d   : > { %1972 = vst [vmem:[%s3693_s27 + $0x18] sm:$0xff] %v2702_v56  ;;  %v2705_v47 = vadd.f32 %v2417_v37, %v278_v22  ;;  %v1117_v59 = vpop.f32.mrb[5].mxu1  ;;  %v1851_v25 = vpop.f32.mrb[5].mxu0 }
 0x16e   : > { %1971 = vst [vmem:[%s3693_s27 + $0x10] sm:$0xff] %v2704_v32  ;;  %v2707_v26 = vadd.f32 %v1117_v59, %v273_v30 }
 0x16f   : > { %v2706_v39 = vadd.f32 %v2705_v47, %v2573_v21 }
 0x170   : > { %v2708_v10 = vadd.f32 %v2707_v26, %v1851_v25  ;;  %v2420_v52 = vpop.f32.mrb[6].mxu1  ;;  %v2576_v40 = vpop.f32.mrb[6].mxu0 }
 0x171   : > { %1974 = vst [vmem:[%s3693_s27 + $0x28] sm:$0xff] %v2706_v39  ;;  %v2709_v63 = vadd.f32 %v2420_v52, %v288_v61  ;;  %v1131_v23 = vpop.f32.mrb[7].mxu1  ;;  %v1863_v50 = vpop.f32.mrb[7].mxu0 }
 0x172   : > { %1973 = vst [vmem:[%s3693_s27 + $0x20] sm:$0xff] %v2708_v10  ;;  %v2711_v8 = vadd.f32 %v1131_v23, %v283_v15 }
 0x173   : > { %v2710_v2 = vadd.f32 %v2709_v63, %v2576_v40 }
 0x174   : > { %v2712_v34 = vadd.f32 %v2711_v8, %v1863_v50  ;;  %v2423_v24 = vpop.f32.mrb[8].mxu1  ;;  %v2579_v51 = vpop.f32.mrb[8].mxu0 }
 0x175   : > { %1976 = vst [vmem:[%s3693_s27 + $0x38] sm:$0xff] %v2710_v2  ;;  %v2713_v41 = vadd.f32 %v2423_v24, %v298_v54  ;;  %v1145_v44 = vpop.f32.mrb[9].mxu1  ;;  %v1875_v1 = vpop.f32.mrb[9].mxu0 }
 0x176   : > { %1975 = vst [vmem:[%s3693_s27 + $0x30] sm:$0xff] %v2712_v34  ;;  %v2715_v53 = vadd.f32 %v1145_v44, %v293_v58  ;;  %v348_v54 = vpop.permute.xlu1 %347  ;;  %v343_v58 = vpop.permute.xlu0 %342 }
 0x177   : > { %v2714_v9 = vadd.f32 %v2713_v41, %v2579_v51 }
 0x178   : > { %v2716_v12 = vadd.f32 %v2715_v53, %v1875_v1  ;;  %v2426_v13 = vpop.f32.mrb[10].mxu1  ;;  %v2582_v14 = vpop.f32.mrb[10].mxu0 }
 0x179   : > { %1978 = vst [vmem:[%s3693_s27 + $0x48] sm:$0xff] %v2714_v9  ;;  %v2717_v38 = vadd.f32 %v2426_v13, %v308_v57  ;;  %v1159_v45 = vpop.f32.mrb[11].mxu1  ;;  %v1887_v46 = vpop.f32.mrb[11].mxu0 }
 0x17a   : > { %1977 = vst [vmem:[%s3693_s27 + $0x40] sm:$0xff] %v2716_v12  ;;  %v2719_v49 = vadd.f32 %v1159_v45, %v3687_v62  ;;  %v358_v48 = vpop.permute.xlu1 %357  ;;  %v353_v20 = vpop.permute.xlu0 %352 }
 0x17b   : > { %v2718_v55 = vadd.f32 %v2717_v38, %v2582_v14 }
 0x17c   : > { %v2720_v28 = vadd.f32 %v2719_v49, %v1887_v46  ;;  %v2429_v4 = vpop.f32.mrb[12].mxu1  ;;  %v2585_v18 = vpop.f32.mrb[12].mxu0 }
 0x17d   : > { %1980 = vst [vmem:[%s3693_s27 + $0x58] sm:$0xff] %v2718_v55  ;;  %v2721_v22 = vadd.f32 %v2429_v4, %v318_v35  ;;  %v1173_v30 = vpop.f32.mrb[13].mxu1  ;;  %v1899_v61 = vpop.f32.mrb[13].mxu0 }
 0x17e   : > { %1979 = vst [vmem:[%s3693_s27 + $0x50] sm:$0xff] %v2720_v28  ;;  %v2723_v15 = vadd.f32 %v1173_v30, %v3691_v36  ;;  %v368_v50 = vpop.permute.xlu1 %367  ;;  %v363_v8 = vpop.permute.xlu0 %362 }
 0x17f   : > { %v2722_v57 = vadd.f32 %v2721_v22, %v2585_v18 }
 0x180   : > { %v2724_v29 = vadd.f32 %v2723_v15, %v1899_v61  ;;  %v2432_v31 = vpop.f32.mrb[14].mxu1  ;;  %v2588_v62 = vpop.f32.mrb[14].mxu0 }
 0x181   : > { %1982 = vst [vmem:[%s3693_s27 + $0x68] sm:$0xff] %v2722_v57  ;;  %v2725_v11 = vadd.f32 %v2432_v31, %v328_v5  ;;  %v1187_v27 = vpop.f32.mrb[15].mxu1  ;;  %v1911_v16 = vpop.f32.mrb[15].mxu0 }
 0x182   : > { %1981 = vst [vmem:[%s3693_s27 + $0x60] sm:$0xff] %v2724_v29  ;;  %v2727_v43 = vadd.f32 %v1187_v27, %v323_v33 }
 0x183   : > { %v2726_v35 = vadd.f32 %v2725_v11, %v2588_v62 }
 0x184   : > { %v2728_v19 = vadd.f32 %v2727_v43, %v1911_v16  ;;  %v2435_v0 = vpop.f32.mrb[16].mxu1  ;;  %v2591_v17 = vpop.f32.mrb[16].mxu0 }
 0x185   : > { %1984 = vst [vmem:[%s3693_s27 + $0x78] sm:$0xff] %v2726_v35  ;;  %v2729_v36 = vadd.f32 %v2435_v0, %v338_v42  ;;  %v1201_v60 = vpop.f32.mrb[17].mxu1  ;;  %v1923_v6 = vpop.f32.mrb[17].mxu0 }
 0x186   : > { %1983 = vst [vmem:[%s3693_s27 + $0x70] sm:$0xff] %v2728_v19  ;;  %v2731_v3 = vadd.f32 %v1201_v60, %v333_v7 }
 0x187   : > { %v2730_v56 = vadd.f32 %v2729_v36, %v2591_v17 }
 0x188   : > { %v2732_v32 = vadd.f32 %v2731_v3, %v1923_v6  ;;  %v2438_v37 = vpop.f32.mrb[18].mxu1  ;;  %v2594_v21 = vpop.f32.mrb[18].mxu0 }
 0x189   : > { %1986 = vst [vmem:[%s3693_s27 + $0x88] sm:$0xff] %v2730_v56  ;;  %v2733_v47 = vadd.f32 %v2438_v37, %v348_v54  ;;  %v1215_v59 = vpop.f32.mrb[19].mxu1  ;;  %v1935_v25 = vpop.f32.mrb[19].mxu0 }
 0x18a   : > { %1985 = vst [vmem:[%s3693_s27 + $0x80] sm:$0xff] %v2732_v32  ;;  %v2735_v26 = vadd.f32 %v1215_v59, %v343_v58 }
 0x18b   : > { %v2734_v5 = vadd.f32 %v2733_v47, %v2594_v21 }
 0x18c   : > { %v2736_v33 = vadd.f32 %v2735_v26, %v1935_v25  ;;  %v2441_v39 = vpop.f32.mrb[20].mxu1  ;;  %v2597_v10 = vpop.f32.mrb[20].mxu0 }
 0x18d   : > { %1988 = vst [vmem:[%s3693_s27 + $0x98] sm:$0xff] %v2734_v5  ;;  %v2737_v52 = vadd.f32 %v2441_v39, %v358_v48  ;;  %v1229_v40 = vpop.f32.mrb[21].mxu1  ;;  %v1947_v63 = vpop.f32.mrb[21].mxu0 }
 0x18e   : > { %1987 = vst [vmem:[%s3693_s27 + $0x90] sm:$0xff] %v2736_v33  ;;  %v2739_v23 = vadd.f32 %v1229_v40, %v353_v20 }
 0x18f   : > { %v2738_v2 = vadd.f32 %v2737_v52, %v2597_v10 }
 0x190   : > { %v2740_v34 = vadd.f32 %v2739_v23, %v1947_v63  ;;  %v2444_v24 = vpop.f32.mrb[22].mxu1  ;;  %v2600_v51 = vpop.f32.mrb[22].mxu0 }
 0x191   : > { %1990 = vst [vmem:[%s3693_s27 + $0xa8] sm:$0xff] %v2738_v2  ;;  %v2741_v41 = vadd.f32 %v2444_v24, %v368_v50  ;;  %v1243_v44 = vpop.f32.mrb[23].mxu1  ;;  %v1959_v1 = vpop.f32.mrb[23].mxu0 }
 0x192   : > { %1989 = vst [vmem:[%s3693_s27 + $0xa0] sm:$0xff] %v2740_v34  ;;  %v2743_v53 = vadd.f32 %v1243_v44, %v363_v8 }
 0x193   : > { %v2742_v42 = vadd.f32 %v2741_v41, %v2600_v51 }
 0x194   : > { %v2744_v7 = vadd.f32 %v2743_v53, %v1959_v1 }
 0x195   : > { %1992 = vst [vmem:[%s3693_s27 + $0xb8] sm:$0xff] %v2742_v42 }
 0x196   : > { %1991 = vst [vmem:[%s3693_s27 + $0xb0] sm:$0xff] %v2744_v7 }
 0x197   : > { %2916 = shalt.err (!%p2913_p5)
}
 0x198   : > { %s2917_s10 = scalar_lea.hbm %s3724_s5, 3072  ;;  %s2921_s19 = scalar_lea.hbm %s3781_s3, 6144 }
 0x199   : > { %p2918_p6 = scmp.ne.s32.totalorder %s3724_s5, %s2917_s10  ;;  %p2922_p10 = scmp.lt.u32.totalorder %s3724_s5, %s3781_s3 }
 0x19a   : > { %p2923_p11 = scmp.lt.u32.totalorder %s2921_s19, %s2917_s10  ;;  %p2925_p13 = scmp.lt.u32.totalorder %s2917_s10, %s3724_s5 }
 0x19b   : > { %p2919_p7 = pnand %p2918_p6, %p3047_p4 }
 0x19c   : > { %p2924_p12 = por %p2923_p11, %p2922_p10 }
 0x19d   : > { %p2920_p9 = pneg %p2919_p7 }
 0x19e   : > { %p2926_p0 = por %p2925_p13, %p2924_p12 }
 0x1a0   : > { %p2927_p1 = pnand %p2926_p0, %p2920_p9 }
 0x1a2   : > { %2930 = shalt.err (!%p2927_p1)
}
 0x1a3   : > { %s2985_s26 = smov 128   ;;  %s2986_s27 = smov 8  }
 0x1a4   : > { %2843 = dma.vmem_to_hbm [thread:$0]  (%p3047_p4), %s3726_s29, 3072, %s3724_s5, %s3732_s15, %s2985_s26, %s2985_s26, %s2986_s27  }
 0x1a5 PF: > { %p2849_p2 = scmp.ge.s32.totalorder %s2981_s17, 2  ;;  %s2023_s28 = sand.u32 1, %s2961_s12  }
 0x1a6   : > { %s2024_s30 = scalar_lea.sflag [#allocation3], %s2023_s28 }
 0x1a7   : > { %p2846_p3 = pnand %p2849_p2, %p3054_p8 }
 0x1a9   : > { %2956 = dma.done.wait (!%p2846_p3), %s2024_s30, 3072  }
 0x1aa   : > { %2958 = vsyncadd (!%p2846_p3), %s2024_s30, 4294964224  ;;  %s16_s17 = sadd.s32 1, %s2981_s17   ;;  %s3852_s12 = smov %s2965_s13 }
 0x1ab   : > { %p13_p5 = scmp.ge.s32.totalorder %s16_s17, 4   ;;  %s3853_s13 = smov %s2969_s14 }
 0x1ac   : > { %s3854_s14 = smov %s3060_s25  ;;  %s3855_s15 = smov %s2977_s16 }
 0x1ad   : > { %s3856_s16 = smov %s3858_s20  ;;  %15 = sbr.rel (!%p13_p5) target bundleno = 4 (0x4), region = 67 }
 0x1b4   :  { %2029 = vsyncpa [#allocation3], 1 }
 0x1b5   :  { %2031 = vsyncpa [#allocation3 + $0x1], 1 }

</bundles_post_ra>
